<compile_context>
chip_gen: v7x
topology: tpu7x:2x2x1
jax: 0.10.0
libtpu: 0.0.40
codegen_flags: <defaults>
</compile_context>

<pallas_src>
import jax
import jax.numpy as jnp
from jax.experimental import pallas as pl
from jax.experimental.pallas import tpu as pltpu

N_PHM = 4
IN_FEATURES = 600 * 4          # 2400
K_PAD = 2432                   # 19 * 128  (lane-aligned contraction dim)
UNITS = 128
BN_EPS = 1e-5


def _round_up(x, m):
    return (x + m - 1) // m * m


def _tile_rows_for_device():
    """Per-generation batch tile: 1024 rows on 128 MiB VMEM parts (v5e/v6e),
    512 rows on 64 MiB parts (v7x)."""
    try:
        vmem = pltpu.get_tpu_info().vmem_capacity_bytes
    except Exception:  # conservative fallback
        vmem = 64 << 20
    return 1024 if vmem >= (128 << 20) else 512


def _eye_ph_kernel(x_ref, w1_ref, s1_ref, w2_ref, s2_ref, o_ref):
    # Layer 1: PHM linear (BN1 + bias folded into w1/s1).  bf16 MXU, f32 accumulate.
    h = jnp.dot(x_ref[...], w1_ref[...], preferred_element_type=jnp.float32)
    h = jnp.maximum(h + s1_ref[...], 0.0)
    # Layer 2: dense linear (BN2 + bias folded into w2/s2).
    h = jnp.dot(h.astype(w2_ref.dtype), w2_ref[...], preferred_element_type=jnp.float32)
    o_ref[...] = jnp.maximum(h + s2_ref[...], 0.0)


@jax.jit
def eye_ph_base_v2(inputs, params):
    """inputs: (B, 600, 4) float32.  Returns (B, 128) float32."""
    B = inputs.shape[0]
    x = inputs.reshape(B, -1).astype(jnp.float32)                     # Flatten -> (B, 2400)
    assert x.shape[1] == IN_FEATURES

    # --- PHM weight built directly in transposed (K, UNITS) layout: W1^T ---
    # W[i*(out/n)+r, j*(in/n)+c] = sum_k A[k,i,j] * S[k,r,c]  =>  W^T via 'jcir'.
    W1T = jnp.einsum("kij,krc->jcir", params["A"], params["S"]).reshape(IN_FEATURES, UNITS)
    W2T = params["W2"].T                                              # (128, 128)

    # --- Fold eval-mode BN + bias into weights / shift rows (one-time f32 work) ---
    s1 = params["bn1_gamma"] * jax.lax.rsqrt(params["bn1_var"] + BN_EPS)
    shift1 = (params["b1"] - params["bn1_mean"]) * s1 + params["bn1_beta"]
    s2 = params["bn2_gamma"] * jax.lax.rsqrt(params["bn2_var"] + BN_EPS)
    shift2 = (params["b2"] - params["bn2_mean"]) * s2 + params["bn2_beta"]
    W1Tf = W1T * s1[None, :]
    W2Tf = W2T * s2[None, :]
    # TODO(synk): for serving with static params, hoist the PHM expansion + folding
    # out of the per-call path (precompute once) instead of recomputing under jit.

    # --- Pad K to a lane multiple (2400 -> 2432): unmasked loads / clean MXU feed ---
    x = jnp.pad(x, ((0, 0), (0, K_PAD - IN_FEATURES)))
    W1Tf = jnp.pad(W1Tf, ((0, K_PAD - IN_FEATURES), (0, 0)))

    # --- bf16 operands (halved HBM traffic, native MXU); accumulation stays f32 ---
    x = x.astype(jnp.bfloat16)
    W1Tf = W1Tf.astype(jnp.bfloat16)
    W2Tf = W2Tf.astype(jnp.bfloat16)
    shift1 = shift1.reshape(1, UNITS).astype(jnp.float32)
    shift2 = shift2.reshape(1, UNITS).astype(jnp.float32)

    # --- Batch tiling: sublane-aligned tile, batch padded to a tile multiple ---
    tb = min(_tile_rows_for_device(), _round_up(B, 8))
    b_pad = _round_up(B, tb)
    if b_pad != B:
        x = jnp.pad(x, ((0, b_pad - B), (0, 0)))
    grid = (b_pad // tb,)

    # VMEM budget from the actual footprint (+ headroom), not the full chip VMEM.
    vmem_limit = int(
        2 * tb * K_PAD * 2          # x, double-buffered bf16
        + K_PAD * UNITS * 2         # W1 resident bf16
        + UNITS * UNITS * 2         # W2 resident bf16
        + 2 * tb * UNITS * 4        # output, double-buffered f32
        + 2 * 2 * UNITS * 4         # shift rows
    ) + (4 << 20)                   # compiler scratch / intermediates headroom

    out = pl.pallas_call(
        _eye_ph_kernel,
        out_shape=jax.ShapeDtypeStruct((b_pad, UNITS), jnp.float32),
        grid_spec=pltpu.PrefetchScalarGridSpec(
            num_scalar_prefetch=0,
            grid=grid,
            in_specs=[
                pl.BlockSpec((tb, K_PAD), lambda i: (i, 0)),      # x: streamed per tile
                pl.BlockSpec((K_PAD, UNITS), lambda i: (0, 0)),   # W1f: resident
                pl.BlockSpec((1, UNITS), lambda i: (0, 0)),       # shift1: resident
                pl.BlockSpec((UNITS, UNITS), lambda i: (0, 0)),   # W2f: resident
                pl.BlockSpec((1, UNITS), lambda i: (0, 0)),       # shift2: resident
            ],
            out_specs=pl.BlockSpec((tb, UNITS), lambda i: (i, 0)),
        ),
        compiler_params=pltpu.CompilerParams(
            dimension_semantics=("parallel",),
            vmem_limit_bytes=vmem_limit,
        ),
    )(x, W1Tf, shift1, W2Tf, shift2)
    return out[:B]


def init_params(key):
    """Deterministic parameter init matching eyePHBasev2.__init__ shapes."""
    k_a, k_s, k_b1, k_w2, k_b2 = jax.random.split(key, 5)
    n = N_PHM
    return {
        # PHMLinear(n=4, in=2400, out=128): A (n,n,n), S (n, out/n, in/n), bias (out,)
        "A": jax.random.normal(k_a, (n, n, n), jnp.float32) * 0.1,
        "S": jax.random.normal(k_s, (n, UNITS // n, IN_FEATURES // n), jnp.float32) * 0.02,
        "b1": jax.random.normal(k_b1, (UNITS,), jnp.float32) * 0.01,
        # BatchNorm1d(128) defaults (eval-mode running stats)
        "bn1_gamma": jnp.ones((UNITS,), jnp.float32),
        "bn1_beta": jnp.zeros((UNITS,), jnp.float32),
        "bn1_mean": jnp.zeros((UNITS,), jnp.float32),
        "bn1_var": jnp.ones((UNITS,), jnp.float32),
        # Linear(128, 128)
        "W2": jax.random.normal(k_w2, (UNITS, UNITS), jnp.float32) * 0.05,
        "b2": jax.random.normal(k_b2, (UNITS,), jnp.float32) * 0.01,
        "bn2_gamma": jnp.ones((UNITS,), jnp.float32),
        "bn2_beta": jnp.zeros((UNITS,), jnp.float32),
        "bn2_mean": jnp.zeros((UNITS,), jnp.float32),
        "bn2_var": jnp.ones((UNITS,), jnp.float32),
    }


def _reference(inputs, params):
    """Pure-JAX f32 reference of the original (un-folded) forward."""
    B = inputs.shape[0]
    x = inputs.reshape(B, -1)
    W1 = jnp.einsum("kij,krc->irjc", params["A"], params["S"]).reshape(UNITS, IN_FEATURES)
    h = x @ W1.T + params["b1"]
    h = (h - params["bn1_mean"]) / jnp.sqrt(params["bn1_var"] + BN_EPS)
    h = h * params["bn1_gamma"] + params["bn1_beta"]
    h = jnp.maximum(h, 0.0)
    h = h @ params["W2"].T + params["b2"]
    h = (h - params["bn2_mean"]) / jnp.sqrt(params["bn2_var"] + BN_EPS)
    h = h * params["bn2_gamma"] + params["bn2_beta"]
    return jnp.maximum(h, 0.0)


if __name__ == "__main__":
    key = jax.random.PRNGKey(0)
    k_x, k_p = jax.random.split(key)

    B = 2
    # eye-modality input: (B, 600, 4)  ->  Flatten -> (B, 2400)
    inputs = jax.random.normal(k_x, (B, 600, N_PHM), jnp.float32)
    params = init_params(k_p)

    out = eye_ph_base_v2(inputs, params)
    out = jax.block_until_ready(out)

    ref = _reference(inputs, params)
    assert out.shape == (B, UNITS)
    # bf16 operands (f32 accumulation) => loosened tolerance vs the f32 reference.
    assert jnp.allclose(out, ref, atol=1e-2, rtol=1e-2), "mismatch vs pure-JAX reference"

    # TODO(synk): BatchNorm1d is implemented in inference mode (running stats);
    # training-mode batch statistics are not reproduced.
    print("KERNEL_OK")
</pallas_src>

<mosaic_0001>
module attributes {stable_mosaic.version = 11 : i64} {
  func.func @_eye_ph_kernel(%arg0: i32, %arg1: memref<8x2432xbf16, #tpu.memory_space<vmem>>, %arg2: memref<2432x128xbf16, #tpu.memory_space<vmem>>, %arg3: memref<1x128xf32, #tpu.memory_space<vmem>>, %arg4: memref<128x128xbf16, #tpu.memory_space<vmem>>, %arg5: memref<1x128xf32, #tpu.memory_space<vmem>>, %arg6: memref<8x128xf32, #tpu.memory_space<vmem>>) attributes {dimension_semantics = [#tpu.dimension_semantics<parallel>], iteration_bounds = array<i64: 1>, scalar_prefetch = 0 : i64, scratch_operands = 0 : i64, tpu.core_type = #tpu.core_type<tc>, window_params = [{transform_indices = @transform_0, window_bounds = array<i64: 8, 2432>}, {pipeline_mode = #tpu.pipeline_mode<synchronous>, transform_indices = @transform_1, window_bounds = array<i64: 2432, 128>}, {pipeline_mode = #tpu.pipeline_mode<synchronous>, transform_indices = @transform_2, window_bounds = array<i64: 1, 128>}, {pipeline_mode = #tpu.pipeline_mode<synchronous>, transform_indices = @transform_3, window_bounds = array<i64: 128, 128>}, {pipeline_mode = #tpu.pipeline_mode<synchronous>, transform_indices = @transform_4, window_bounds = array<i64: 1, 128>}, {transform_indices = @transform_5, window_bounds = array<i64: 8, 128>}]} {
    %c0 = arith.constant 0 : index
    %c0_0 = arith.constant 0 : index
    %0 = vector.load %arg1[%c0, %c0_0] : memref<8x2432xbf16, #tpu.memory_space<vmem>>, vector<8x2432xbf16>
    %c0_1 = arith.constant 0 : index
    %c0_2 = arith.constant 0 : index
    %1 = vector.load %arg2[%c0_1, %c0_2] : memref<2432x128xbf16, #tpu.memory_space<vmem>>, vector<2432x128xbf16>
    %cst = arith.constant dense<0.000000e+00> : vector<8x128xf32>
    %2 = tpu.matmul %0, %1, %cst {dimension_numbers = #tpu.dot_dimension_numbers<[1], [0], [0], [1], [0, 0, 1, 1], [], []>} : vector<8x2432xbf16>, vector<2432x128xbf16>, vector<8x128xf32> -> vector<8x128xf32>
    %c0_3 = arith.constant 0 : index
    %c0_4 = arith.constant 0 : index
    %3 = vector.load %arg3[%c0_3, %c0_4] : memref<1x128xf32, #tpu.memory_space<vmem>>, vector<1x128xf32>
    %4 = vector.broadcast %3 : vector<1x128xf32> to vector<8x128xf32>
    %5 = arith.addf %2, %4 : vector<8x128xf32>
    %cst_5 = arith.constant 0.000000e+00 : f32
    %6 = vector.broadcast %cst_5 : f32 to vector<8x128xf32>
    %7 = arith.maximumf %5, %6 : vector<8x128xf32>
    %8 = arith.truncf %7 : vector<8x128xf32> to vector<8x128xbf16>
    %c0_6 = arith.constant 0 : index
    %c0_7 = arith.constant 0 : index
    %9 = vector.load %arg4[%c0_6, %c0_7] : memref<128x128xbf16, #tpu.memory_space<vmem>>, vector<128x128xbf16>
    %cst_8 = arith.constant dense<0.000000e+00> : vector<8x128xf32>
    %10 = tpu.matmul %8, %9, %cst_8 {dimension_numbers = #tpu.dot_dimension_numbers<[1], [0], [0], [1], [0, 0, 1, 1], [], []>} : vector<8x128xbf16>, vector<128x128xbf16>, vector<8x128xf32> -> vector<8x128xf32>
    %c0_9 = arith.constant 0 : index
    %c0_10 = arith.constant 0 : index
    %11 = vector.load %arg5[%c0_9, %c0_10] : memref<1x128xf32, #tpu.memory_space<vmem>>, vector<1x128xf32>
    %12 = vector.broadcast %11 : vector<1x128xf32> to vector<8x128xf32>
    %13 = arith.addf %10, %12 : vector<8x128xf32>
    %cst_11 = arith.constant 0.000000e+00 : f32
    %14 = vector.broadcast %cst_11 : f32 to vector<8x128xf32>
    %15 = arith.maximumf %13, %14 : vector<8x128xf32>
    %c0_12 = arith.constant 0 : index
    %c0_13 = arith.constant 0 : index
    %16 = vector.load %arg6[%c0_12, %c0_13] : memref<8x128xf32, #tpu.memory_space<vmem>>, vector<8x128xf32>
    tpu.vector_store %arg6[%c0_12, %c0_13], %15 {strides = array<i32>} : memref<8x128xf32, #tpu.memory_space<vmem>>, vector<8x128xf32>,
    return
  }
  func.func @transform_0(%arg0: i32) -> (i32, i32) {
    %c0_i32 = arith.constant 0 : i32
    %c0_i32_0 = arith.constant 0 : i32
    return %arg0, %c0_i32 : i32, i32
  }
  func.func @transform_1(%arg0: i32) -> (i32, i32) {
    %c0_i32 = arith.constant 0 : i32
    %c0_i32_0 = arith.constant 0 : i32
    %c0_i32_1 = arith.constant 0 : i32
    return %c0_i32, %c0_i32_0 : i32, i32
  }
  func.func @transform_2(%arg0: i32) -> (i32, i32) {
    %c0_i32 = arith.constant 0 : i32
    %c0_i32_0 = arith.constant 0 : i32
    %c0_i32_1 = arith.constant 0 : i32
    return %c0_i32, %c0_i32_0 : i32, i32
  }
  func.func @transform_3(%arg0: i32) -> (i32, i32) {
    %c0_i32 = arith.constant 0 : i32
    %c0_i32_0 = arith.constant 0 : i32
    %c0_i32_1 = arith.constant 0 : i32
    return %c0_i32, %c0_i32_0 : i32, i32
  }
  func.func @transform_4(%arg0: i32) -> (i32, i32) {
    %c0_i32 = arith.constant 0 : i32
    %c0_i32_0 = arith.constant 0 : i32
    %c0_i32_1 = arith.constant 0 : i32
    return %c0_i32, %c0_i32_0 : i32, i32
  }
  func.func @transform_5(%arg0: i32) -> (i32, i32) {
    %c0_i32 = arith.constant 0 : i32
    %c0_i32_0 = arith.constant 0 : i32
    return %arg0, %c0_i32 : i32, i32
  }
}

</mosaic_0001>

<bundles_post_ra>
// kernel: eye_ph_base_v2.1
= control target key start
LH: loop header
LB: loop body
LE: loop exit
PB: predicated region body
PF: predicated region fallthrough
CT: control target
= control target key end

     0   :  { %vm2459_vm0 = vmmov 0   ;;  %s3029_s1 = inlined_call_operand.vmem [shape: bf16[2432,128], index: 1, kind: input, shape index: {}]   ;;  %s3030_s0 = inlined_call_operand.vmem [shape: bf16[8,2432], index: 0, kind: input, shape index: {}]   ;;  %s3031_s3 = inlined_call_operand.vmem [shape: bf16[128,128], index: 3, kind: input, shape index: {}]   ;;  %s3032_s2 = inlined_call_operand.vmem [shape: f32[1,128], index: 2, kind: input, shape index: {}]   ;;  %s3033_s4 = inlined_call_operand.vmem [shape: f32[1,128], index: 4, kind: input, shape index: {}]   ;;  %s3034_s5 = inlined_call_operand.vmem [shape: f32[8,128], index: 5, kind: output, shape index: {}]  }
   0x1   :  { %v2279_v0 = vld [vmem:[%s3029_s1 + $0x40] sm:$0xff]   ;;  %v2283_v4 = vld [vmem:[%s3029_s1 + $0x48] sm:$0xff]   ;;  %v2287_v8 = vld [vmem:[%s3029_s1 + $0x50] sm:$0xff]  }
   0x2   :  { %v2280_v1 = vld [vmem:[%s3029_s1] sm:$0xff]   ;;  %2021 = vmatprep.subr.bf16.mxu0 %v2279_v0  ;;  %v2284_v5 = vld [vmem:[%s3029_s1 + $0x8] sm:$0xff]   ;;  %v2288_v9 = vld [vmem:[%s3029_s1 + $0x10] sm:$0xff]  }
   0x3   :  { %v2281_v2 = vld [vmem:[%s3029_s1 + $0xc0] sm:$0xff]   ;;  %2022 = vmatpush3.bf16.msra.mxu0 %v2280_v1  ;;  %v2285_v6 = vld [vmem:[%s3029_s1 + $0xc8] sm:$0xff]   ;;  %v2289_v10 = vld [vmem:[%s3029_s1 + $0xd0] sm:$0xff]  }
   0x4   :  { %v2282_v3 = vld [vmem:[%s3029_s1 + $0x80] sm:$0xff]   ;;  %2043 = vmatprep.subr.bf16.mxu1 %v2281_v2  ;;  %2023 = vmatprep.subr.bf16.mxu0 %v2283_v4  ;;  %v2286_v7 = vld [vmem:[%s3029_s1 + $0x88] sm:$0xff]   ;;  %v2290_v11 = vld [vmem:[%s3029_s1 + $0x90] sm:$0xff]  }
   0x5   :  { %2044 = vmatpush3.bf16.msra.mxu1 %v2282_v3  ;;  %v2291_v12 = vld [vmem:[%s3029_s1 + $0x58] sm:$0xff]   ;;  %v2295_v16 = vld [vmem:[%s3029_s1 + $0x60] sm:$0xff]   ;;  %v2299_v20 = vld [vmem:[%s3029_s1 + $0x68] sm:$0xff]  }
   0x6   :  { %2045 = vmatprep.subr.bf16.mxu1 %v2285_v6  ;;  %v2292_v13 = vld [vmem:[%s3029_s1 + $0x18] sm:$0xff]   ;;  %v2296_v17 = vld [vmem:[%s3029_s1 + $0x20] sm:$0xff]   ;;  %v2300_v21 = vld [vmem:[%s3029_s1 + $0x28] sm:$0xff]  }
   0x7   :  { %2024 = vmatpush3.bf16.msra.mxu0 %v2284_v5  ;;  %v2293_v14 = vld [vmem:[%s3029_s1 + $0xd8] sm:$0xff]   ;;  %v2297_v18 = vld [vmem:[%s3029_s1 + $0xe0] sm:$0xff]   ;;  %v2301_v22 = vld [vmem:[%s3029_s1 + $0xe8] sm:$0xff]  }
   0x8   :  { %2025 = vmatprep.subr.bf16.mxu0 %v2287_v8  ;;  %v2294_v15 = vld [vmem:[%s3029_s1 + $0x98] sm:$0xff]   ;;  %v2298_v19 = vld [vmem:[%s3029_s1 + $0xa0] sm:$0xff]   ;;  %v2302_v23 = vld [vmem:[%s3029_s1 + $0xa8] sm:$0xff]  }
   0x9   :  { %2046 = vmatpush3.bf16.msra.mxu1 %v2286_v7  ;;  %v2303_v24 = vld [vmem:[%s3029_s1 + $0x70] sm:$0xff]   ;;  %v2307_v28 = vld [vmem:[%s3029_s1 + $0x78] sm:$0xff]   ;;  %v21_v31 = vld [vmem:[%s3030_s0] sm:$0xff] }
   0xa   :  { %2047 = vmatprep.subr.bf16.mxu1 %v2289_v10  ;;  %v2304_v25 = vld [vmem:[%s3029_s1 + $0x30] sm:$0xff]   ;;  %v2308_v29 = vld [vmem:[%s3029_s1 + $0x38] sm:$0xff]   ;;  %v1841_v32 = vcombine.low %v21_v31, %v21_v31  ;;  %v1842_v33 = vcombine.high %v21_v31, %v21_v31  ;;  %v2313_v35 = vld [vmem:[%s3029_s1 + $0x140] sm:$0xff]  }
   0xb   :  { %2026 = vmatpush3.bf16.msra.mxu0 %v2288_v9  ;;  %v2305_v26 = vld [vmem:[%s3029_s1 + $0xf0] sm:$0xff]   ;;  %v2309_v30 = vld [vmem:[%s3029_s1 + $0xf8] sm:$0xff]   ;;  %v22_v36 = vld [vmem:[%s3030_s0 + $0x8] sm:$0xff] }
   0xc   :  { %2027 = vmatprep.subr.bf16.mxu0 %v2291_v12  ;;  %v2306_v27 = vld [vmem:[%s3029_s1 + $0xb0] sm:$0xff]   ;;  %v2312_v34 = vld [vmem:[%s3029_s1 + $0xb8] sm:$0xff]   ;;  %1353 = vmatprep.mubr.bf16.mxu0 %v1842_v33  ;;  %v1843_v37 = vcombine.low %v22_v36, %v22_v36  ;;  %v1844_v38 = vcombine.high %v22_v36, %v22_v36  ;;  %v2316_v39 = vld [vmem:[%s3029_s1 + $0x100] sm:$0xff]  }
   0xd   :  { %2048 = vmatpush3.bf16.msra.mxu1 %v2290_v11  ;;  %v2317_v40 = vld [vmem:[%s3029_s1 + $0x1c0] sm:$0xff]   ;;  %v2319_v42 = vld [vmem:[%s3029_s1 + $0x148] sm:$0xff]   ;;  %v2323_v46 = vld [vmem:[%s3029_s1 + $0x150] sm:$0xff]  }
   0xe   :  { %2049 = vmatprep.subr.bf16.mxu1 %v2293_v14  ;;  %1393 = vmatprep.mubr.bf16.mxu1 %v1844_v38  ;;  %v2318_v41 = vld [vmem:[%s3029_s1 + $0x180] sm:$0xff]   ;;  %v2320_v43 = vld [vmem:[%s3029_s1 + $0x108] sm:$0xff]   ;;  %v2324_v47 = vld [vmem:[%s3029_s1 + $0x110] sm:$0xff]  }
   0xf   :  { %2028 = vmatpush3.bf16.msra.mxu0 %v2292_v13  ;;  %v2321_v44 = vld [vmem:[%s3029_s1 + $0x1c8] sm:$0xff]   ;;  %v2325_v48 = vld [vmem:[%s3029_s1 + $0x1d0] sm:$0xff]   ;;  %v2327_v50 = vld [vmem:[%s3029_s1 + $0x158] sm:$0xff]  }
  0x10   :  { %2029 = vmatprep.subr.bf16.mxu0 %v2295_v16  ;;  %v2322_v45 = vld [vmem:[%s3029_s1 + $0x188] sm:$0xff]   ;;  %v2326_v49 = vld [vmem:[%s3029_s1 + $0x190] sm:$0xff]   ;;  %v2328_v51 = vld [vmem:[%s3029_s1 + $0x118] sm:$0xff]  }
  0x11   :  { %2050 = vmatpush3.bf16.msra.mxu1 %v2294_v15  ;;  %v2329_v52 = vld [vmem:[%s3029_s1 + $0x1d8] sm:$0xff]   ;;  %v2331_v54 = vld [vmem:[%s3029_s1 + $0x160] sm:$0xff]   ;;  %v2335_v58 = vld [vmem:[%s3029_s1 + $0x168] sm:$0xff]  }
  0x12   :  { %2051 = vmatprep.subr.bf16.mxu1 %v2297_v18  ;;  %v2330_v53 = vld [vmem:[%s3029_s1 + $0x198] sm:$0xff]   ;;  %v2332_v55 = vld [vmem:[%s3029_s1 + $0x120] sm:$0xff]   ;;  %v2336_v59 = vld [vmem:[%s3029_s1 + $0x128] sm:$0xff]  }
  0x13   :  { %2030 = vmatpush3.bf16.msra.mxu0 %v2296_v17  ;;  %v2333_v56 = vld [vmem:[%s3029_s1 + $0x1e0] sm:$0xff]   ;;  %v2337_v60 = vld [vmem:[%s3029_s1 + $0x1e8] sm:$0xff]   ;;  %v2339_v62 = vld [vmem:[%s3029_s1 + $0x170] sm:$0xff]  }
  0x14   :  { %2031 = vmatprep.subr.bf16.mxu0 %v2299_v20  ;;  %v2334_v57 = vld [vmem:[%s3029_s1 + $0x1a0] sm:$0xff]   ;;  %v2338_v61 = vld [vmem:[%s3029_s1 + $0x1a8] sm:$0xff]   ;;  %v2340_v63 = vld [vmem:[%s3029_s1 + $0x130] sm:$0xff]  }
  0x15   :  { %2052 = vmatpush3.bf16.msra.mxu1 %v2298_v19  ;;  %v2341_v0 = vld [vmem:[%s3029_s1 + $0x1f0] sm:$0xff]   ;;  %v2343_v2 = vld [vmem:[%s3029_s1 + $0x178] sm:$0xff]   ;;  %v2349_v9 = vld [vmem:[%s3029_s1 + $0x240] sm:$0xff]  }
  0x16   :  { %2053 = vmatprep.subr.bf16.mxu1 %v2301_v22  ;;  %v2342_v1 = vld [vmem:[%s3029_s1 + $0x1b0] sm:$0xff]   ;;  %v2344_v3 = vld [vmem:[%s3029_s1 + $0x138] sm:$0xff]   ;;  %v2352_v13 = vld [vmem:[%s3029_s1 + $0x200] sm:$0xff]  }
  0x17   :  { %2032 = vmatpush3.bf16.msra.mxu0 %v2300_v21  ;;  %v2345_v4 = vld [vmem:[%s3029_s1 + $0x1f8] sm:$0xff]   ;;  %v23_v5 = vld [vmem:[%s3030_s0 + $0x10] sm:$0xff]  ;;  %v2353_v14 = vld [vmem:[%s3029_s1 + $0x2c0] sm:$0xff]  }
  0x18   :  { %2033 = vmatprep.subr.bf16.mxu0 %v2303_v24  ;;  %v1845_v6 = vcombine.low %v23_v5, %v23_v5  ;;  %v1846_v7 = vcombine.high %v23_v5, %v23_v5  ;;  %v2348_v8 = vld [vmem:[%s3029_s1 + $0x1b8] sm:$0xff]   ;;  %v2354_v15 = vld [vmem:[%s3029_s1 + $0x280] sm:$0xff]   ;;  %v2355_v16 = vld [vmem:[%s3029_s1 + $0x248] sm:$0xff]  }
  0x19   :  { %2054 = vmatpush3.bf16.msra.mxu1 %v2302_v23  ;;  %v24_v10 = vld [vmem:[%s3030_s0 + $0x18] sm:$0xff]  ;;  %v2356_v17 = vld [vmem:[%s3029_s1 + $0x208] sm:$0xff]   ;;  %v2359_v20 = vld [vmem:[%s3029_s1 + $0x250] sm:$0xff]  }
  0x1a   :  { %2055 = vmatprep.subr.bf16.mxu1 %v2305_v26  ;;  %v1847_v11 = vcombine.low %v24_v10, %v24_v10  ;;  %v1848_v12 = vcombine.high %v24_v10, %v24_v10  ;;  %v2357_v18 = vld [vmem:[%s3029_s1 + $0x2c8] sm:$0xff]   ;;  %v2360_v21 = vld [vmem:[%s3029_s1 + $0x210] sm:$0xff]   ;;  %v2363_v24 = vld [vmem:[%s3029_s1 + $0x258] sm:$0xff]  }
  0x1b   :  { %2034 = vmatpush3.bf16.msra.mxu0 %v2304_v25  ;;  %v2358_v19 = vld [vmem:[%s3029_s1 + $0x288] sm:$0xff]   ;;  %v2361_v22 = vld [vmem:[%s3029_s1 + $0x2d0] sm:$0xff]   ;;  %v2364_v25 = vld [vmem:[%s3029_s1 + $0x218] sm:$0xff]  }
  0x1c   :  { %2035 = vmatprep.subr.bf16.mxu0 %v2307_v28  ;;  %v2362_v23 = vld [vmem:[%s3029_s1 + $0x290] sm:$0xff]   ;;  %v2365_v26 = vld [vmem:[%s3029_s1 + $0x2d8] sm:$0xff]   ;;  %v2367_v28 = vld [vmem:[%s3029_s1 + $0x260] sm:$0xff]  }
  0x1d   :  { %2056 = vmatpush3.bf16.msra.mxu1 %v2306_v27  ;;  %v2366_v27 = vld [vmem:[%s3029_s1 + $0x298] sm:$0xff]   ;;  %v2370_v31 = vld [vmem:[%s3029_s1 + $0x2a0] sm:$0xff]   ;;  %v2372_v33 = vld [vmem:[%s3029_s1 + $0x228] sm:$0xff]  }
  0x1e   :  { %2057 = vmatprep.subr.bf16.mxu1 %v2309_v30  ;;  %v2369_v30 = vld [vmem:[%s3029_s1 + $0x2e0] sm:$0xff]   ;;  %v2375_v36 = vld [vmem:[%s3029_s1 + $0x270] sm:$0xff]  }
  0x1f   :  { %2036 = vmatpush3.bf16.msra.mxu0 %v2308_v29  ;;  %v2368_v29 = vld [vmem:[%s3029_s1 + $0x220] sm:$0xff]   ;;  %v2377_v38 = vld [vmem:[%s3029_s1 + $0x2f0] sm:$0xff]  }
  0x20   :  { %2065 = vmatprep.subr.bf16.mxu0 %v2313_v35  ;;  %v2374_v35 = vld [vmem:[%s3029_s1 + $0x2a8] sm:$0xff]   ;;  %v2406_v5 = vld [vmem:[%s3029_s1 + $0x3a0] sm:$0xff]   ;;  %v2411_v10 = vld [vmem:[%s3029_s1 + $0x370] sm:$0xff]  }
  0x21   :  { %2058 = vmatpush3.bf16.msra.mxu1 %v2312_v34  ;;  %v2373_v34 = vld [vmem:[%s3029_s1 + $0x2e8] sm:$0xff]  }
  0x22   :  { %1354 = vmatmul.mubr.bf16.vlgmr.msra.gmra.mrb[0].mxu0 %v1841_v32  ;;  %2087 = vmatprep.subr.bf16.mxu1 %v2317_v40  ;;  %v2371_v32 = vld [vmem:[%s3029_s1 + $0x268] sm:$0xff]   ;;  %v2379_v40 = vld [vmem:[%s3029_s1 + $0x278] sm:$0xff]  }
  0x23   :  { %2066 = vmatpush3.bf16.msra.mxu0 %v2316_v39  ;;  %1433 = vmatprep.mubr.bf16.mxu0 %v1846_v7  ;;  %v2378_v39 = vld [vmem:[%s3029_s1 + $0x2b0] sm:$0xff]   ;;  %v2408_v7 = vld [vmem:[%s3029_s1 + $0x328] sm:$0xff]  }
  0x24   :  { %1394 = vmatmul.mubr.bf16.vlgmr.msra.gmra.mrb[0].mxu1 %v1843_v37  ;;  %2067 = vmatprep.subr.bf16.mxu0 %v2319_v42  ;;  %v2376_v37 = vld [vmem:[%s3029_s1 + $0x230] sm:$0xff]   ;;  %v2381_v42 = vld [vmem:[%s3029_s1 + $0x2f8] sm:$0xff]  }
  0x25   :  { %2088 = vmatpush3.bf16.msra.mxu1 %v2318_v41  ;;  %1473 = vmatprep.mubr.bf16.mxu1 %v1848_v12  ;;  %v2380_v41 = vld [vmem:[%s3029_s1 + $0x238] sm:$0xff]   ;;  %v2413_v12 = vld [vmem:[%s3029_s1 + $0x3f0] sm:$0xff]  }
  0x26   :  { %2089 = vmatprep.subr.bf16.mxu1 %v2321_v44 }
  0x27   :  { %2068 = vmatpush3.bf16.msra.mxu0 %v2320_v43  ;;  %v25_v43 = vld [vmem:[%s3030_s0 + $0x20] sm:$0xff] }
  0x28   :  { %2069 = vmatprep.subr.bf16.mxu0 %v2323_v46  ;;  %v1849_v44 = vcombine.low %v25_v43, %v25_v43  ;;  %v2384_v46 = vld [vmem:[%s3029_s1 + $0x2b8] sm:$0xff]  }
  0x29   :  { %2090 = vmatpush3.bf16.msra.mxu1 %v2322_v45  ;;  %v1850_v45 = vcombine.high %v25_v43, %v25_v43  ;;  %v2440_v43 = vld [vmem:[%s3029_s1 + $0x4a8] sm:$0xff]  }
  0x2a   :  { %2091 = vmatprep.subr.bf16.mxu1 %v2325_v48  ;;  %v26_v48 = vld [vmem:[%s3030_s0 + $0x28] sm:$0xff] }
  0x2b   :  { %2070 = vmatpush3.bf16.msra.mxu0 %v2324_v47  ;;  %v2385_v47 = vld [vmem:[%s3029_s1 + $0x340] sm:$0xff]  }
  0x2c   :  { %2071 = vmatprep.subr.bf16.mxu0 %v2327_v50  ;;  %v1852_v50 = vcombine.high %v26_v48, %v26_v48 }
  0x2d   :  { %2092 = vmatpush3.bf16.msra.mxu1 %v2326_v49  ;;  %v1851_v49 = vcombine.low %v26_v48, %v26_v48  ;;  %v2443_v48 = vld [vmem:[%s3029_s1 + $0x4b0] sm:$0xff]  }
  0x2e   :  { %2093 = vmatprep.subr.bf16.mxu1 %v2329_v52  ;;  %v2389_v52 = vld [vmem:[%s3029_s1 + $0x3c0] sm:$0xff]  }
  0x2f   :  { %2072 = vmatpush3.bf16.msra.mxu0 %v2328_v51  ;;  %v2388_v51 = vld [vmem:[%s3029_s1 + $0x300] sm:$0xff]  }
  0x30   :  { %2073 = vmatprep.subr.bf16.mxu0 %v2331_v54  ;;  %v2391_v54 = vld [vmem:[%s3029_s1 + $0x348] sm:$0xff]  }
  0x31   :  { %2094 = vmatpush3.bf16.msra.mxu1 %v2330_v53  ;;  %v2390_v53 = vld [vmem:[%s3029_s1 + $0x380] sm:$0xff]  }
  0x32   :  { %2095 = vmatprep.subr.bf16.mxu1 %v2333_v56  ;;  %v2393_v56 = vld [vmem:[%s3029_s1 + $0x3c8] sm:$0xff]  }
  0x33   :  { %2074 = vmatpush3.bf16.msra.mxu0 %v2332_v55  ;;  %v2392_v55 = vld [vmem:[%s3029_s1 + $0x308] sm:$0xff]  }
  0x34   :  { %2075 = vmatprep.subr.bf16.mxu0 %v2335_v58  ;;  %v2395_v58 = vld [vmem:[%s3029_s1 + $0x350] sm:$0xff]  }
  0x35   :  { %2096 = vmatpush3.bf16.msra.mxu1 %v2334_v57  ;;  %v2394_v57 = vld [vmem:[%s3029_s1 + $0x388] sm:$0xff]  }
  0x36   :  { %2097 = vmatprep.subr.bf16.mxu1 %v2337_v60  ;;  %v2397_v60 = vld [vmem:[%s3029_s1 + $0x3d0] sm:$0xff]  }
  0x37   :  { %2076 = vmatpush3.bf16.msra.mxu0 %v2336_v59  ;;  %v2396_v59 = vld [vmem:[%s3029_s1 + $0x310] sm:$0xff]  }
  0x38   :  { %2077 = vmatprep.subr.bf16.mxu0 %v2339_v62  ;;  %v2399_v62 = vld [vmem:[%s3029_s1 + $0x358] sm:$0xff]  }
  0x39   :  { %2098 = vmatpush3.bf16.msra.mxu1 %v2338_v61  ;;  %v2398_v61 = vld [vmem:[%s3029_s1 + $0x390] sm:$0xff]  }
  0x3a   :  { %2099 = vmatprep.subr.bf16.mxu1 %v2341_v0  ;;  %v2401_v0 = vld [vmem:[%s3029_s1 + $0x3d8] sm:$0xff]  }
  0x3b   :  { %2078 = vmatpush3.bf16.msra.mxu0 %v2340_v63  ;;  %v2400_v63 = vld [vmem:[%s3029_s1 + $0x318] sm:$0xff]  }
  0x3c   :  { %2079 = vmatprep.subr.bf16.mxu0 %v2343_v2  ;;  %v2403_v2 = vld [vmem:[%s3029_s1 + $0x360] sm:$0xff]  }
  0x3d   :  { %2100 = vmatpush3.bf16.msra.mxu1 %v2342_v1  ;;  %v2402_v1 = vld [vmem:[%s3029_s1 + $0x398] sm:$0xff]  }
  0x3e   :  { %2101 = vmatprep.subr.bf16.mxu1 %v2345_v4  ;;  %v2405_v4 = vld [vmem:[%s3029_s1 + $0x3e0] sm:$0xff]  }
  0x3f   :  { %2080 = vmatpush3.bf16.msra.mxu0 %v2344_v3  ;;  %v2404_v3 = vld [vmem:[%s3029_s1 + $0x320] sm:$0xff]  }
  0x40   :  { %2109 = vmatprep.subr.bf16.mxu0 %v2349_v9  ;;  %v2410_v9 = vld [vmem:[%s3029_s1 + $0x3a8] sm:$0xff]  }
  0x41   :  { %2102 = vmatpush3.bf16.msra.mxu1 %v2348_v8  ;;  %v2409_v8 = vld [vmem:[%s3029_s1 + $0x3e8] sm:$0xff]  }
  0x42   :  { %1434 = vmatmul.mubr.bf16.vlgmr.msra.gmra.mrb[4].mxu0 %v1845_v6  ;;  %2131 = vmatprep.subr.bf16.mxu1 %v2353_v14  ;;  %v2407_v6 = vld [vmem:[%s3029_s1 + $0x368] sm:$0xff]   ;;  %v2415_v14 = vld [vmem:[%s3029_s1 + $0x378] sm:$0xff]  }
  0x43   :  { %2110 = vmatpush3.bf16.msra.mxu0 %v2352_v13  ;;  %1513 = vmatprep.mubr.bf16.mxu0 %v1850_v45  ;;  %v2414_v13 = vld [vmem:[%s3029_s1 + $0x3b0] sm:$0xff]  }
  0x44   :  { %1474 = vmatmul.mubr.bf16.vlgmr.msra.gmra.mrb[4].mxu1 %v1847_v11  ;;  %2111 = vmatprep.subr.bf16.mxu0 %v2355_v16  ;;  %v2412_v11 = vld [vmem:[%s3029_s1 + $0x330] sm:$0xff]   ;;  %v2417_v16 = vld [vmem:[%s3029_s1 + $0x3f8] sm:$0xff]  }
  0x45   :  { %2132 = vmatpush3.bf16.msra.mxu1 %v2354_v15  ;;  %1553 = vmatprep.mubr.bf16.mxu1 %v1852_v50  ;;  %v2416_v15 = vld [vmem:[%s3029_s1 + $0x338] sm:$0xff]   ;;  %v2442_v45 = vld [vmem:[%s3029_s1 + $0x430] sm:$0xff]  }
  0x46   :  { %2133 = vmatprep.subr.bf16.mxu1 %v2357_v18  ;;  %v2448_v50 = vld [vmem:[%s3029_s1 + $0x4b8] sm:$0xff]  }
  0x47   :  { %2112 = vmatpush3.bf16.msra.mxu0 %v2356_v17  ;;  %v27_v17 = vld [vmem:[%s3030_s0 + $0x30] sm:$0xff] }
  0x48   :  { %2113 = vmatprep.subr.bf16.mxu0 %v2359_v20  ;;  %v1853_v18 = vcombine.low %v27_v17, %v27_v17  ;;  %v2420_v20 = vld [vmem:[%s3029_s1 + $0x3b8] sm:$0xff]  }
  0x49   :  { %2134 = vmatpush3.bf16.msra.mxu1 %v2358_v19  ;;  %v1854_v19 = vcombine.high %v27_v17, %v27_v17 }
  0x4a   :  { %2135 = vmatprep.subr.bf16.mxu1 %v2361_v22  ;;  %v28_v22 = vld [vmem:[%s3030_s0 + $0x38] sm:$0xff] }
  0x4b   :  { %2114 = vmatpush3.bf16.msra.mxu0 %v2360_v21  ;;  %v2421_v21 = vld [vmem:[%s3029_s1 + $0x440] sm:$0xff]  }
  0x4c   :  { %2115 = vmatprep.subr.bf16.mxu0 %v2363_v24  ;;  %v1856_v24 = vcombine.high %v28_v22, %v28_v22 }
  0x4d   :  { %2136 = vmatpush3.bf16.msra.mxu1 %v2362_v23  ;;  %v1855_v23 = vcombine.low %v28_v22, %v28_v22 }
  0x4e   :  { %2137 = vmatprep.subr.bf16.mxu1 %v2365_v26  ;;  %v2425_v26 = vld [vmem:[%s3029_s1 + $0x480] sm:$0xff]  }
  0x4f   :  { %2116 = vmatpush3.bf16.msra.mxu0 %v2364_v25  ;;  %v2424_v25 = vld [vmem:[%s3029_s1 + $0x400] sm:$0xff]  }
  0x50   :  { %2117 = vmatprep.subr.bf16.mxu0 %v2367_v28  ;;  %v2458_v28 = vmov 0.0  }
  0x51   :  { %2138 = vmatpush3.bf16.msra.mxu1 %v2366_v27  ;;  %v2426_v27 = vld [vmem:[%s3029_s1 + $0x448] sm:$0xff]  }
  0x52   :  { %2139 = vmatprep.subr.bf16.mxu1 %v2369_v30  ;;  %v2428_v30 = vld [vmem:[%s3029_s1 + $0x488] sm:$0xff]  }
  0x53   :  { %2118 = vmatpush3.bf16.msra.mxu0 %v2368_v29  ;;  %v2427_v29 = vld [vmem:[%s3029_s1 + $0x408] sm:$0xff]  }
  0x54   :  { %2119 = vmatprep.subr.bf16.mxu0 %v2371_v32  ;;  %v2430_v32 = vld [vmem:[%s3029_s1 + $0x410] sm:$0xff]  }
  0x55   :  { %2140 = vmatpush3.bf16.msra.mxu1 %v2370_v31  ;;  %v2429_v31 = vld [vmem:[%s3029_s1 + $0x450] sm:$0xff]  }
  0x56   :  { %2141 = vmatprep.subr.bf16.mxu1 %v2373_v34  ;;  %v2432_v34 = vld [vmem:[%s3029_s1 + $0x458] sm:$0xff]  }
  0x57   :  { %2120 = vmatpush3.bf16.msra.mxu0 %v2372_v33  ;;  %v2431_v33 = vld [vmem:[%s3029_s1 + $0x490] sm:$0xff]  }
  0x58   :  { %2121 = vmatprep.subr.bf16.mxu0 %v2375_v36  ;;  %v2435_v36 = vld [vmem:[%s3029_s1 + $0x460] sm:$0xff]  }
  0x59   :  { %2142 = vmatpush3.bf16.msra.mxu1 %v2374_v35  ;;  %v2433_v35 = vld [vmem:[%s3029_s1 + $0x418] sm:$0xff]  }
  0x5a   :  { %2143 = vmatprep.subr.bf16.mxu1 %v2377_v38  ;;  %v2436_v38 = vld [vmem:[%s3029_s1 + $0x420] sm:$0xff]  }
  0x5b   :  { %2122 = vmatpush3.bf16.msra.mxu0 %v2376_v37  ;;  %v2434_v37 = vld [vmem:[%s3029_s1 + $0x498] sm:$0xff]  }
  0x5c   :  { %2123 = vmatprep.subr.bf16.mxu0 %v2379_v40  ;;  %v2437_v40 = vld [vmem:[%s3029_s1 + $0x4a0] sm:$0xff]  }
  0x5d   :  { %2144 = vmatpush3.bf16.msra.mxu1 %v2378_v39  ;;  %v2438_v39 = vld [vmem:[%s3029_s1 + $0x468] sm:$0xff]  }
  0x5e   :  { %2145 = vmatprep.subr.bf16.mxu1 %v2381_v42  ;;  %v2441_v42 = vld [vmem:[%s3029_s1 + $0x470] sm:$0xff]  }
  0x5f   :  { %2124 = vmatpush3.bf16.msra.mxu0 %v2380_v41  ;;  %v2439_v41 = vld [vmem:[%s3029_s1 + $0x428] sm:$0xff]  }
  0x60   :  { %2153 = vmatprep.subr.bf16.mxu0 %v2385_v47  ;;  %v2444_v47 = vld [vmem:[%s3029_s1 + $0x478] sm:$0xff]  }
  0x61   :  { %2146 = vmatpush3.bf16.msra.mxu1 %v2384_v46 }
  0x62   :  { %1514 = vmatmul.mubr.bf16.vlgmr.msra.gmra.mrb[8].mxu0 %v1849_v44  ;;  %2175 = vmatprep.subr.bf16.mxu1 %v2389_v52  ;;  %v29_v44 = vld [vmem:[%s3030_s0 + $0x40] sm:$0xff]  ;;  %v2449_v52 = vld [vmem:[%s3030_s0 + $0x48] ss:$0 sps:$4 sm:$0xff]  }
  0x63   :  { %2154 = vmatpush3.bf16.msra.mxu0 %v2388_v51  ;;  %1593 = vmatprep.mubr.bf16.mxu0 %v1854_v19  ;;  %v1858_v46 = vcombine.high %v29_v44, %v29_v44  ;;  %v1857_v51 = vcombine.low %v29_v44, %v29_v44 }
  0x64   :  { %1554 = vmatmul.mubr.bf16.vlgmr.msra.gmra.mrb[8].mxu1 %v1851_v49  ;;  %2155 = vmatprep.subr.bf16.mxu0 %v2391_v54  ;;  %v2445_v49 = vld [vmem:[%s3029_s1 + $0x438] sm:$0xff]   ;;  %v2451_v54 = vld [vmem:[%s3031_s3 + $0x8] sm:$0xff]  }
  0x65   :  { %2176 = vmatpush3.bf16.msra.mxu1 %v2390_v53  ;;  %1633 = vmatprep.mubr.bf16.mxu1 %v1856_v24  ;;  %v2450_v53 = vld [vmem:[%s3031_s3] sm:$0xff]  }
  0x66   :  { %2177 = vmatprep.subr.bf16.mxu1 %v2393_v56  ;;  %v2453_v56 = vld [vmem:[%s3031_s3 + $0x18] sm:$0xff]  }
  0x67   :  { %2156 = vmatpush3.bf16.msra.mxu0 %v2392_v55  ;;  %v2452_v55 = vld [vmem:[%s3031_s3 + $0x10] sm:$0xff]  }
  0x68   :  { %2157 = vmatprep.subr.bf16.mxu0 %v2395_v58 }
  0x69   :  { %2178 = vmatpush3.bf16.msra.mxu1 %v2394_v57  ;;  %v2454_v57 = vld [vmem:[%s3031_s3 + $0x20] sm:$0xff]  }
  0x6a   :  { %2179 = vmatprep.subr.bf16.mxu1 %v2397_v60 }
  0x6b   :  { %2158 = vmatpush3.bf16.msra.mxu0 %v2396_v59  ;;  %v1840_v59 = vld [vmem:[%s3032_s2] ss:$0 sm:$0xff] }
  0x6c   :  { %2159 = vmatprep.subr.bf16.mxu0 %v2399_v62 }
  0x6d   :  { %2180 = vmatpush3.bf16.msra.mxu1 %v2398_v61  ;;  %v2455_v61 = vld [vmem:[%s3031_s3 + $0x28] sm:$0xff]  }
  0x6e   :  { %2181 = vmatprep.subr.bf16.mxu1 %v2401_v0 }
  0x6f   :  { %2160 = vmatpush3.bf16.msra.mxu0 %v2400_v63 }
  0x70   :  { %2161 = vmatprep.subr.bf16.mxu0 %v2403_v2 }
  0x71   :  { %2182 = vmatpush3.bf16.msra.mxu1 %v2402_v1 }
  0x72   :  { %2183 = vmatprep.subr.bf16.mxu1 %v2405_v4 }
  0x73   :  { %2162 = vmatpush3.bf16.msra.mxu0 %v2404_v3 }
  0x74   :  { %2163 = vmatprep.subr.bf16.mxu0 %v2407_v6 }
  0x75   :  { %2184 = vmatpush3.bf16.msra.mxu1 %v2406_v5 }
  0x76   :  { %2185 = vmatprep.subr.bf16.mxu1 %v2409_v8 }
  0x77   :  { %2164 = vmatpush3.bf16.msra.mxu0 %v2408_v7  ;;  %v2456_v7 = vld [vmem:[%s3031_s3 + $0x30] sm:$0xff]  }
  0x78   :  { %2165 = vmatprep.subr.bf16.mxu0 %v2411_v10 }
  0x79   :  { %2186 = vmatpush3.bf16.msra.mxu1 %v2410_v9  ;;  %v2457_v9 = vld [vmem:[%s3031_s3 + $0x38] sm:$0xff]  }
  0x7a   :  { %2187 = vmatprep.subr.bf16.mxu1 %v2413_v12 }
  0x7b   :  { %2166 = vmatpush3.bf16.msra.mxu0 %v2412_v11 }
  0x7c   :  { %2167 = vmatprep.subr.bf16.mxu0 %v2415_v14 }
  0x7d   :  { %2188 = vmatpush3.bf16.msra.mxu1 %v2414_v13 }
  0x7e   :  { %2189 = vmatprep.subr.bf16.mxu1 %v2417_v16 }
  0x7f   :  { %2168 = vmatpush3.bf16.msra.mxu0 %v2416_v15 }
  0x80   :  { %2197 = vmatprep.subr.bf16.mxu0 %v2421_v21 }
  0x81   :  { %2190 = vmatpush3.bf16.msra.mxu1 %v2420_v20 }
  0x82   :  { %1594 = vmatmul.mubr.bf16.vlgmr.msra.gmra.mrb[12].mxu0 %v1853_v18  ;;  %2237 = vmatprep.subr.bf16.mxu1 %v2458_v28 }
  0x83   :  { %2198 = vmatpush3.bf16.msra.mxu0 %v2424_v25  ;;  %1673 = vmatprep.mubr.bf16.mxu0 %v1858_v46 }
  0x84   :  { %1634 = vmatmul.mubr.bf16.vlgmr.msra.gmra.mrb[12].mxu1 %v1855_v23  ;;  %2199 = vmatprep.subr.bf16.mxu0 %v2426_v27 }
  0x85   :  { %2238 = vmatpush3.bf16.msra.mxu1 %v2425_v26  ;;  %2253 = vmatprep.mubr.msk.bf16.mxu1 %vm2459_vm0, %v2458_v28 }
  0x86   :  { %2239 = vmatprep.subr.bf16.mxu1 %v2458_v28 }
  0x87   :  { %2200 = vmatpush3.bf16.msra.mxu0 %v2427_v29 }
  0x88   :  { %2201 = vmatprep.subr.bf16.mxu0 %v2429_v31 }
  0x89   :  { %2240 = vmatpush3.bf16.msra.mxu1 %v2428_v30 }
  0x8a   :  { %2241 = vmatprep.subr.bf16.mxu1 %v2458_v28 }
  0x8b   :  { %2202 = vmatpush3.bf16.msra.mxu0 %v2430_v32 }
  0x8c   :  { %2203 = vmatprep.subr.bf16.mxu0 %v2432_v34 }
  0x8d   :  { %2242 = vmatpush3.bf16.msra.mxu1 %v2431_v33 }
  0x8e   :  { %2243 = vmatprep.subr.bf16.mxu1 %v2458_v28 }
  0x8f   :  { %2204 = vmatpush3.bf16.msra.mxu0 %v2433_v35 }
  0x90   :  { %2205 = vmatprep.subr.bf16.mxu0 %v2435_v36 }
  0x91   :  { %2244 = vmatpush3.bf16.msra.mxu1 %v2434_v37 }
  0x92   :  { %2245 = vmatprep.subr.bf16.mxu1 %v2458_v28 }
  0x93   :  { %2206 = vmatpush3.bf16.msra.mxu0 %v2436_v38 }
  0x94   :  { %2207 = vmatprep.subr.bf16.mxu0 %v2438_v39 }
  0x95   :  { %2246 = vmatpush3.bf16.msra.mxu1 %v2437_v40 }
  0x96   :  { %2247 = vmatprep.subr.bf16.mxu1 %v2458_v28 }
  0x97   :  { %2208 = vmatpush3.bf16.msra.mxu0 %v2439_v41 }
  0x98   :  { %2209 = vmatprep.subr.bf16.mxu0 %v2441_v42 }
  0x99   :  { %2248 = vmatpush3.bf16.msra.mxu1 %v2440_v43 }
  0x9a   :  { %2249 = vmatprep.subr.bf16.mxu1 %v2458_v28 }
  0x9b   :  { %2210 = vmatpush3.bf16.msra.mxu0 %v2442_v45 }
  0x9c   :  { %2211 = vmatprep.subr.bf16.mxu0 %v2444_v47 }
  0x9d   :  { %2250 = vmatpush3.bf16.msra.mxu1 %v2443_v48 }
  0x9e   :  { %2251 = vmatprep.subr.bf16.mxu1 %v2458_v28 }
  0x9f   :  { %2212 = vmatpush3.bf16.msra.mxu0 %v2445_v49 }
  0xa0   :  { %2257 = vmatprep.subr.bf16.mxu0 %v2458_v28 }
  0xa1   :  { %2252 = vmatpush3.bf16.msra.mxu1 %v2448_v50 }
  0xa2   :  { %1674 = vmatmul.mubr.bf16.vlgmr.msra.gmra.mrb[16].mxu0 %v1857_v51 }
  0xa3   :  { %2273 = vmatprep.mubr.msk.bf16.mxu0 %vm2459_vm0, %v2458_v28  ;;  %2258 = vmatpush3.bf16.msra.mxu0 %v2450_v53 }
  0xa4   :  { %2254 = vmatmul.mubr.bf16.vlgmr.msra.gmra.mrb[16].mxu1 %v2449_v52  ;;  %2259 = vmatprep.subr.bf16.mxu0 %v2458_v28 }
  0xa7   :  { %2260 = vmatpush3.bf16.msra.mxu0 %v2451_v54 }
  0xa8   :  { %2261 = vmatprep.subr.bf16.mxu0 %v2458_v28 }
  0xab   :  { %2262 = vmatpush3.bf16.msra.mxu0 %v2452_v55 }
  0xac   :  { %2263 = vmatprep.subr.bf16.mxu0 %v2458_v28 }
  0xaf   :  { %2264 = vmatpush3.bf16.msra.mxu0 %v2453_v56 }
  0xb0   :  { %2265 = vmatprep.subr.bf16.mxu0 %v2458_v28 }
  0xb3   :  { %2266 = vmatpush3.bf16.msra.mxu0 %v2454_v57 }
  0xb4   :  { %2267 = vmatprep.subr.bf16.mxu0 %v2458_v28 }
  0xb7   :  { %2268 = vmatpush3.bf16.msra.mxu0 %v2455_v61 }
  0xb8   :  { %2269 = vmatprep.subr.bf16.mxu0 %v2458_v28 }
  0xbb   :  { %2270 = vmatpush3.bf16.msra.mxu0 %v2456_v7 }
  0xbc   :  { %2271 = vmatprep.subr.bf16.mxu0 %v2458_v28 }
  0xbf   :  { %2272 = vmatpush3.bf16.msra.mxu0 %v2457_v9 }
  0xf5   :  { %v2037_v58 = vpop.f32.mrb[0].mxu0 }
  0xf6   :  { %v2038_v60 = vpop.f32.mrb[1].mxu0 }
  0xf7   :  { %v2039_v62 = vadd.f32 %v2038_v60, %v2037_v58  ;;  %v2040_v63 = vpop.f32.mrb[2].mxu0  ;;  %v2059_v0 = vpop.f32.mrb[0].mxu1 }
  0xf8   :  { %v2041_v1 = vpop.f32.mrb[3].mxu0  ;;  %v2060_v2 = vpop.f32.mrb[1].mxu1 }
  0xf9   :  { %v1356_v3 = vadd.f32 %v2039_v62, %v1840_v59  ;;  %v2061_v4 = vadd.f32 %v2060_v2, %v2059_v0  ;;  %v2062_v5 = vpop.f32.mrb[2].mxu1  ;;  %v2012_v59 = vld [vmem:[%s3033_s4] ss:$0 sm:$0xff] }
  0xfa   :  { %v2063_v6 = vpop.f32.mrb[3].mxu1 }
  0xfb   :  { %v1396_v8 = vadd.f32 %v2061_v4, %v1356_v3 }
 0x115   :  { %v2081_v10 = vpop.f32.mrb[4].mxu0 }
 0x116   :  { %v2082_v11 = vpop.f32.mrb[5].mxu0 }
 0x117   :  { %v2083_v12 = vadd.f32 %v2082_v11, %v2081_v10  ;;  %v2084_v13 = vpop.f32.mrb[6].mxu0  ;;  %v2103_v14 = vpop.f32.mrb[4].mxu1 }
 0x118   :  { %v2085_v15 = vpop.f32.mrb[7].mxu0  ;;  %v2104_v17 = vpop.f32.mrb[5].mxu1 }
 0x119   :  { %v1436_v16 = vadd.f32 %v2083_v12, %v1396_v8  ;;  %v2105_v18 = vadd.f32 %v2104_v17, %v2103_v14  ;;  %v2106_v19 = vpop.f32.mrb[6].mxu1 }
 0x11a   :  { %v2107_v20 = vpop.f32.mrb[7].mxu1 }
 0x11b   :  { %v1476_v21 = vadd.f32 %v2105_v18, %v1436_v16 }
 0x135   :  { %v2125_v22 = vpop.f32.mrb[8].mxu0 }
 0x136   :  { %v2126_v23 = vpop.f32.mrb[9].mxu0 }
 0x137   :  { %v2127_v24 = vadd.f32 %v2126_v23, %v2125_v22  ;;  %v2128_v25 = vpop.f32.mrb[10].mxu0  ;;  %v2147_v26 = vpop.f32.mrb[8].mxu1 }
 0x138   :  { %v2129_v27 = vpop.f32.mrb[11].mxu0  ;;  %v2148_v28 = vpop.f32.mrb[9].mxu1 }
 0x139   :  { %v1516_v29 = vadd.f32 %v2127_v24, %v1476_v21  ;;  %v2149_v30 = vadd.f32 %v2148_v28, %v2147_v26  ;;  %v2150_v31 = vpop.f32.mrb[10].mxu1 }
 0x13a   :  { %v2151_v32 = vpop.f32.mrb[11].mxu1 }
 0x13b   :  { %v1556_v33 = vadd.f32 %v2149_v30, %v1516_v29 }
 0x155   :  { %v2169_v34 = vpop.f32.mrb[12].mxu0 }
 0x156   :  { %v2170_v35 = vpop.f32.mrb[13].mxu0 }
 0x157   :  { %v2171_v36 = vadd.f32 %v2170_v35, %v2169_v34  ;;  %v2172_v37 = vpop.f32.mrb[14].mxu0  ;;  %v2191_v38 = vpop.f32.mrb[12].mxu1 }
 0x158   :  { %v2173_v39 = vpop.f32.mrb[15].mxu0  ;;  %v2192_v40 = vpop.f32.mrb[13].mxu1 }
 0x159   :  { %v1596_v41 = vadd.f32 %v2171_v36, %v1556_v33  ;;  %v2193_v42 = vadd.f32 %v2192_v40, %v2191_v38  ;;  %v2194_v43 = vpop.f32.mrb[14].mxu1 }
 0x15a   :  { %v2195_v44 = vpop.f32.mrb[15].mxu1 }
 0x15b   :  { %v1636_v45 = vadd.f32 %v2193_v42, %v1596_v41 }
 0x175   :  { %v2213_v46 = vpop.f32.mrb[16].mxu0 }
 0x176   :  { %v2214_v47 = vpop.f32.mrb[17].mxu0 }
 0x177   :  { %v2215_v48 = vadd.f32 %v2214_v47, %v2213_v46  ;;  %v2216_v49 = vpop.f32.mrb[18].mxu0  ;;  %v1715_v50 = vpop.f32.mrb[16].mxu1 }
 0x178   :  { %v2217_v51 = vpop.f32.mrb[19].mxu0  ;;  %v2255_v52 = vpop.f32.mrb[17].mxu1 }
 0x179   :  { %v1676_v53 = vadd.f32 %v2215_v48, %v1636_v45  ;;  %v1718_v54 = vpop.f32.mrb[18].mxu1 }
 0x17a   :  { %v2256_v55 = vpop.f32.mrb[19].mxu1 }
 0x17b   :  { %v1716_v56 = vadd.f32 %v1715_v50, %v1676_v53 }
 0x17d   :  { %v1721_v57 = vmax.f32 %v1716_v56, 0.0 }
 0x17f   :  { %v1722_v58 = vpack.c.bf16 %v1721_v57, %v1721_v57 }
 0x181   :  { %2274 = vmatmul.mubr.bf16.vlgmr.msra.gmra.mrb[20].mxu0 %v1722_v58 }
 0x254   :  { %v1828_v60 = vpop.f32.mrb[20].mxu0 }
 0x255   :  { %v1829_v61 = vadd.f32 %v2012_v59, %v1828_v60  ;;  %v2275_v62 = vpop.f32.mrb[21].mxu0 }
 0x256   :  { %v1831_v63 = vpop.f32.mrb[22].mxu0 }
 0x257   :  { %v1834_v0 = vmax.f32 %v1829_v61, 0.0  ;;  %v2276_v1 = vpop.f32.mrb[23].mxu0 }
 0x259   :  { %1835 = vst [vmem:[%s3034_s5] sm:$0xff] %v1834_v0 }

</bundles_post_ra>
